<compile_context>
chip_gen: v5e
topology: v5e:2x2
jax: 0.10.0
libtpu: 0.0.40
codegen_flags: <defaults>
</compile_context>

<pallas_src>
import functools
import numpy as np
import jax
import jax.numpy as jnp
from jax.experimental import pallas as pl
from jax.experimental.pallas import tpu as pltpu


# ---------------------------------------------------------------------------
# Host-side weight preprocessing (tiny; done once per weight set).
# ---------------------------------------------------------------------------

def _spectral_normalize(w, n_iters=50):
    """W / sigma(W); sigma via converged power iteration on W.reshape(cout, -1)."""
    w = np.asarray(w, np.float64)
    wm = w.reshape(w.shape[0], -1)
    v = np.ones((wm.shape[1],), np.float64) / np.sqrt(wm.shape[1])
    u = wm @ v
    for _ in range(n_iters):
        u = wm @ v
        u /= np.linalg.norm(u) + 1e-12
        v = wm.T @ u
        v /= np.linalg.norm(v) + 1e-12
    sigma = float(u @ (wm @ v))
    return (w / sigma).astype(np.float32)


def _bn_fold(gamma, beta, mean, var, eps=1e-5):
    """Eval-mode BatchNorm -> per-channel (scale, bias)."""
    gamma = np.asarray(gamma, np.float64)
    beta = np.asarray(beta, np.float64)
    mean = np.asarray(mean, np.float64)
    var = np.asarray(var, np.float64)
    scale = gamma / np.sqrt(var + eps)
    bias = beta - mean * scale
    return scale.astype(np.float32), bias.astype(np.float32)


def _l1_taps(w1n, s1, cin, cout):
    """conv4x4/s2/p1 re-expressed as <=9 taps on the space-to-depth input.

    s2d channel index = (2*dh + dw)*cin + ci  with
    x_s2d[(2*dh+dw)*cin + ci, ho, wo] = x[ci, 2*ho+dh, 2*wo+dw].
    Tap index t = (dr+1)*3 + (dc+1) reads s2d position (ho+dr, wo+dc).
    """
    taps = np.zeros((3, 3, cout, 4, cin), np.float32)
    for kh in range(4):
        dr, dh = divmod(kh - 1, 2)          # input row = 2*(ho+dr) + dh
        for kw in range(4):
            dc, dw = divmod(kw - 1, 2)      # input col = 2*(wo+dc) + dw
            taps[dr + 1, dc + 1, :, 2 * dh + dw, :] += s1[:, None] * w1n[:, :, kh, kw]
    return taps.reshape(9, cout, 4 * cin)


def _l2_taps(w2n, s2, cout, post_scale):
    """conv3x3/s1/p1 taps with BN scale and the trailing residual 1/2 folded in."""
    taps = np.zeros((3, 3, cout, cout), np.float32)
    eff = (post_scale * s2)[:, None]
    for kh in range(3):
        for kw in range(3):
            taps[kh, kw] = eff * w2n[:, :, kh, kw]
    return taps.reshape(9, cout, cout)


def _direct_w(w3n, s3, cin, cout, post_scale):
    """AvgPool2d(2,2)+conv1x1 == one shift-free (cout, 4*cin) matmul on x_s2d."""
    base = (post_scale * s3)[:, None] * (0.25 * w3n[:, :, 0, 0])
    w = np.zeros((cout, 4, cin), np.float32)
    for q in range(4):
        w[:, q, :] = base
    return w.reshape(cout, 4 * cin)


# ---------------------------------------------------------------------------
# Pallas kernel: full DownBlockComp forward for one batch element.
# ---------------------------------------------------------------------------

def _down_block_kernel(xs_ref, w1_ref, b1_ref, w2_ref, b2_ref, w3_ref, b3_ref,
                       cm_ref, o_ref, pad1_ref, pad2_ref, *, npix, wout):
    pad = wout + 1

    def conv_taps(src_pad_ref, w_ref, b_ref):
        """9 banded taps: sum_t W[t] @ shifted(src); then bias + LeakyReLU(0.2)."""
        cout = w_ref.shape[1]
        acc = jnp.zeros((cout, npix), jnp.float32)
        for dc in (-1, 0, 1):
            part = jnp.zeros((cout, npix), jnp.float32)
            for dr in (-1, 0, 1):
                t = (dr + 1) * 3 + (dc + 1)
                # static lane-offset slice of the zero-padded bf16 slab
                slab = src_pad_ref[:, pl.ds(pad + dr * wout + dc, npix)]
                part = part + jnp.dot(w_ref[t], slab,
                                      preferred_element_type=jnp.float32)
            if dc == -1:                                 # kill row-wrapped columns
                part = part * cm_ref[pl.ds(0, 1), :]
            elif dc == 1:
                part = part * cm_ref[pl.ds(1, 1), :]
            acc = acc + part
        z = acc + b_ref[...]                             # BN bias (f32, broadcast)
        return jnp.maximum(z, 0.2 * z)                   # LeakyReLU(0.2) on the VPU

    # Stage 0: zero-padded bf16 copy of the space-to-depth input.
    pad1_ref[...] = jnp.zeros_like(pad1_ref)
    xs_b = xs_ref[...].astype(jnp.bfloat16)
    pad1_ref[:, pl.ds(pad, npix)] = xs_b

    # Direct path: avgpool2 + 1x1 conv + BN + LReLU (0.25, BN scale, 1/2 folded).
    zd = jnp.dot(w3_ref[...], xs_b, preferred_element_type=jnp.float32) + b3_ref[...]
    direct = jnp.maximum(zd, 0.2 * zd)

    # Main path, layer 1: conv4x4/s2/p1 + BN + LReLU (9 banded taps on s2d input).
    act1 = conv_taps(pad1_ref, w1_ref, b1_ref)

    pad2_ref[...] = jnp.zeros_like(pad2_ref)
    pad2_ref[:, pl.ds(pad, npix)] = act1.astype(jnp.bfloat16)

    # Main path, layer 2: conv3x3/s1/p1 + BN + LReLU (final 1/2 already folded).
    main = conv_taps(pad2_ref, w2_ref, b2_ref)

    o_ref[...] = (main + direct).astype(o_ref.dtype)


def down_block_comp(x, w1, bn1, w2, bn2, w3, bn3):
    """DownBlockComp.forward (NCHW, eval-mode BN, spectral-normalized weights).

    x  : (B, Cin, H, W), H and W even
    w1 : (Cout, Cin, 4, 4)   w2 : (Cout, Cout, 3, 3)   w3 : (Cout, Cin, 1, 1)
    bn*: (gamma, beta, running_mean, running_var)
    returns (B, Cout, H//2, W//2) in x.dtype
    """
    B, Cin, H, W = x.shape
    Cout = w1.shape[0]
    assert H % 2 == 0 and W % 2 == 0
    Hout, Wout = H // 2, W // 2
    NPIX = Hout * Wout
    PAD = Wout + 1
    NPIX_PAD = NPIX + 2 * PAD

    # Host-side folding: spectral norm, BN scale/bias, avgpool 0.25, final 1/2.
    w1n, w2n, w3n = map(_spectral_normalize, (w1, w2, w3))
    s1, b1 = _bn_fold(*bn1)
    s2, b2 = _bn_fold(*bn2)
    s3, b3 = _bn_fold(*bn3)

    W1 = _l1_taps(w1n, s1, Cin, Cout)                     # (9, Cout, 4*Cin)
    W2 = _l2_taps(w2n, s2, Cout, post_scale=0.5)          # (9, Cout, Cout)
    W3 = _direct_w(w3n, s3, Cin, Cout, post_scale=0.5)    # (Cout, 4*Cin)
    B1 = b1[:, None]
    B2 = (0.5 * b2)[:, None]
    B3 = (0.5 * b3)[:, None]

    # Column masks for the +-1 lane shifts (zero out row-wrap positions).
    col = np.arange(NPIX, dtype=np.int64) % Wout
    CM = np.stack([(col >= 1), (col <= Wout - 2)], axis=0).astype(np.float32)

    # Space-to-depth re-layout: (B, 4*Cin, Hout*Wout); lane dim = output pixels.
    x_s2d = (x.reshape(B, Cin, Hout, 2, Wout, 2)
              .transpose(0, 3, 5, 1, 2, 4)
              .reshape(B, 4 * Cin, NPIX))

    kernel = functools.partial(_down_block_kernel, npix=NPIX, wout=Wout)

    grid_spec = pltpu.PrefetchScalarGridSpec(
        num_scalar_prefetch=0,
        grid=(B,),
        in_specs=[
            pl.BlockSpec((None, 4 * Cin, NPIX), lambda b: (b, 0, 0)),
            pl.BlockSpec((9, Cout, 4 * Cin), lambda b: (0, 0, 0)),
            pl.BlockSpec((Cout, 1), lambda b: (0, 0)),
            pl.BlockSpec((9, Cout, Cout), lambda b: (0, 0, 0)),
            pl.BlockSpec((Cout, 1), lambda b: (0, 0)),
            pl.BlockSpec((Cout, 4 * Cin), lambda b: (0, 0)),
            pl.BlockSpec((Cout, 1), lambda b: (0, 0)),
            pl.BlockSpec((2, NPIX), lambda b: (0, 0)),
        ],
        out_specs=pl.BlockSpec((None, Cout, NPIX), lambda b: (b, 0, 0)),
        scratch_shapes=[
            pltpu.VMEM((4 * Cin, NPIX_PAD), jnp.bfloat16),   # padded s2d input
            pltpu.VMEM((Cout, NPIX_PAD), jnp.bfloat16),      # padded layer-1 act
        ],
    )

    # True conv FLOPs / bytes (not the tap-padded count) for XLA's scheduler.
    flops = int(2 * B * NPIX * (Cout * Cin * 16 + Cout * Cout * 9 + Cout * Cin))
    bytes_accessed = int(B * 4 * Cin * NPIX * x.dtype.itemsize
                         + B * Cout * NPIX * x.dtype.itemsize
                         + 2 * (W1.size + W2.size + W3.size))

    out = pl.pallas_call(
        kernel,
        out_shape=jax.ShapeDtypeStruct((B, Cout, NPIX), x.dtype),
        grid_spec=grid_spec,
        compiler_params=pltpu.CompilerParams(
            dimension_semantics=("parallel",),
            vmem_limit_bytes=64 * 1024 * 1024),
        cost_estimate=pl.CostEstimate(flops=flops, transcendentals=0,
                                      bytes_accessed=bytes_accessed),
    )(x_s2d,
      jnp.asarray(W1, dtype=jnp.bfloat16), jnp.asarray(B1),
      jnp.asarray(W2, dtype=jnp.bfloat16), jnp.asarray(B2),
      jnp.asarray(W3, dtype=jnp.bfloat16), jnp.asarray(B3),
      jnp.asarray(CM))

    # Free reshape: (Cout, Npix) row-major == (Cout, Hout, Wout).
    return out.reshape(B, Cout, Hout, Wout)


# ---------------------------------------------------------------------------
# Pure-JAX reference (same normalized weights, eval-mode BN) for verification.
# ---------------------------------------------------------------------------

def _ref_down_block_comp(x, w1n, bn1, w2n, bn2, w3n, bn3):
    eps = 1e-5

    def bn(y, p):
        g, b, m, v = [jnp.asarray(t, jnp.float32) for t in p]
        return ((y - m[None, :, None, None])
                * (g / jnp.sqrt(v + eps))[None, :, None, None]
                + b[None, :, None, None])

    def lrelu(y):
        return jnp.where(y >= 0, y, 0.2 * y)

    def conv(y, w, stride, pad):
        return jax.lax.conv_general_dilated(
            y, jnp.asarray(w, jnp.float32), window_strides=(stride, stride),
            padding=[(pad, pad), (pad, pad)],
            dimension_numbers=("NCHW", "OIHW", "NCHW"),
            precision=jax.lax.Precision.HIGHEST)

    m = lrelu(bn(conv(x, w1n, 2, 1), bn1))
    m = lrelu(bn(conv(m, w2n, 1, 1), bn2))
    B, C, H, W = x.shape
    pooled = x.reshape(B, C, H // 2, 2, W // 2, 2).mean(axis=(3, 5))
    d = lrelu(bn(conv(pooled, w3n, 1, 0), bn3))
    return (m + d) / 2


if __name__ == "__main__":
    B, Cin, Cout, H, W = 2, 4, 8, 16, 16
    key = jax.random.PRNGKey(0)
    ks = jax.random.split(key, 8)

    x = jax.random.normal(ks[0], (B, Cin, H, W), jnp.float32)
    w1 = jax.random.normal(ks[1], (Cout, Cin, 4, 4), jnp.float32) * 0.2
    w2 = jax.random.normal(ks[2], (Cout, Cout, 3, 3), jnp.float32) * 0.2
    w3 = jax.random.normal(ks[3], (Cout, Cin, 1, 1), jnp.float32) * 0.2

    def rand_bn(k, c):
        k1, k2, k3, k4 = jax.random.split(k, 4)
        gamma = 1.0 + 0.1 * jax.random.normal(k1, (c,), jnp.float32)
        beta = 0.1 * jax.random.normal(k2, (c,), jnp.float32)
        mean = 0.1 * jax.random.normal(k3, (c,), jnp.float32)
        var = jax.random.uniform(k4, (c,), jnp.float32, minval=0.5, maxval=1.5)
        return (gamma, beta, mean, var)

    bn1 = rand_bn(ks[4], Cout)
    bn2 = rand_bn(ks[5], Cout)
    bn3 = rand_bn(ks[6], Cout)

    out = down_block_comp(x, w1, bn1, w2, bn2, w3, bn3)
    out = jax.block_until_ready(out)
    assert out.shape == (B, Cout, H // 2, W // 2)

    # Reference with identically-preprocessed (spectrally normalized) weights.
    w1n = _spectral_normalize(w1)
    w2n = _spectral_normalize(w2)
    w3n = _spectral_normalize(w3)
    ref = jax.block_until_ready(_ref_down_block_comp(x, w1n, bn1, w2n, bn2, w3n, bn3))

    out_np, ref_np = np.asarray(out), np.asarray(ref)
    max_err = float(np.max(np.abs(out_np - ref_np)))
    # bf16 matmul operands (f32 accumulation) => looser tolerance than pure f32.
    assert np.allclose(out_np, ref_np, atol=5e-2, rtol=5e-2), f"max err = {max_err}"
    print("KERNEL_OK")
</pallas_src>

<mosaic_0001>
module attributes {stable_mosaic.version = 11 : i64} {
  func.func @_down_block_kernel(%arg0: i32, %arg1: memref<1x16x64xf32, #tpu.memory_space<vmem>>, %arg2: memref<9x8x16xbf16, #tpu.memory_space<vmem>>, %arg3: memref<8x1xf32, #tpu.memory_space<vmem>>, %arg4: memref<9x8x8xbf16, #tpu.memory_space<vmem>>, %arg5: memref<8x1xf32, #tpu.memory_space<vmem>>, %arg6: memref<8x16xbf16, #tpu.memory_space<vmem>>, %arg7: memref<8x1xf32, #tpu.memory_space<vmem>>, %arg8: memref<2x64xf32, #tpu.memory_space<vmem>>, %arg9: memref<1x8x64xf32, #tpu.memory_space<vmem>>, %arg10: memref<16x82xbf16, #tpu.memory_space<vmem>>, %arg11: memref<8x82xbf16, #tpu.memory_space<vmem>>) attributes {dimension_semantics = [#tpu.dimension_semantics<parallel>], iteration_bounds = array<i64: 2>, scalar_prefetch = 0 : i64, scratch_operands = 2 : i64, tpu.core_type = #tpu.core_type<tc>, window_params = [{transform_indices = @transform_0, window_bounds = array<i64: 1, 16, 64>}, {pipeline_mode = #tpu.pipeline_mode<synchronous>, transform_indices = @transform_1, window_bounds = array<i64: 9, 8, 16>}, {pipeline_mode = #tpu.pipeline_mode<synchronous>, transform_indices = @transform_2, window_bounds = array<i64: 8, 1>}, {pipeline_mode = #tpu.pipeline_mode<synchronous>, transform_indices = @transform_3, window_bounds = array<i64: 9, 8, 8>}, {pipeline_mode = #tpu.pipeline_mode<synchronous>, transform_indices = @transform_4, window_bounds = array<i64: 8, 1>}, {pipeline_mode = #tpu.pipeline_mode<synchronous>, transform_indices = @transform_5, window_bounds = array<i64: 8, 16>}, {pipeline_mode = #tpu.pipeline_mode<synchronous>, transform_indices = @transform_6, window_bounds = array<i64: 8, 1>}, {pipeline_mode = #tpu.pipeline_mode<synchronous>, transform_indices = @transform_7, window_bounds = array<i64: 2, 64>}, {transform_indices = @transform_8, window_bounds = array<i64: 1, 8, 64>}]} {
    %cst = arith.constant 0.000000e+00 : bf16
    %0 = vector.broadcast %cst : bf16 to vector<16x82xbf16>
    %c0 = arith.constant 0 : index
    %c0_0 = arith.constant 0 : index
    %1 = vector.load %arg10[%c0, %c0_0] : memref<16x82xbf16, #tpu.memory_space<vmem>>, vector<16x82xbf16>
    tpu.vector_store %arg10[%c0, %c0_0], %0 {strides = array<i32>} : memref<16x82xbf16, #tpu.memory_space<vmem>>, vector<16x82xbf16>,
    %c0_1 = arith.constant 0 : index
    %c0_2 = arith.constant 0 : index
    %c0_3 = arith.constant 0 : index
    %2 = vector.load %arg1[%c0_1, %c0_2, %c0_3] : memref<1x16x64xf32, #tpu.memory_space<vmem>>, vector<1x16x64xf32>
    %3 = vector.shape_cast %2 : vector<1x16x64xf32> to vector<16x64xf32>
    %4 = arith.truncf %3 : vector<16x64xf32> to vector<16x64xbf16>
    %c0_4 = arith.constant 0 : index
    %c9 = arith.constant 9 : index
    %5 = vector.load %arg10[%c0_4, %c9] : memref<16x82xbf16, #tpu.memory_space<vmem>>, vector<16x64xbf16>
    tpu.vector_store %arg10[%c0_4, %c9], %4 {strides = array<i32>} : memref<16x82xbf16, #tpu.memory_space<vmem>>, vector<16x64xbf16>,
    %c0_5 = arith.constant 0 : index
    %c0_6 = arith.constant 0 : index
    %6 = vector.load %arg6[%c0_5, %c0_6] : memref<8x16xbf16, #tpu.memory_space<vmem>>, vector<8x16xbf16>
    %cst_7 = arith.constant dense<0.000000e+00> : vector<8x64xf32>
    %7 = tpu.matmul %6, %4, %cst_7 {dimension_numbers = #tpu.dot_dimension_numbers<[1], [0], [0], [1], [0, 0, 1, 1], [], []>} : vector<8x16xbf16>, vector<16x64xbf16>, vector<8x64xf32> -> vector<8x64xf32>
    %c0_8 = arith.constant 0 : index
    %c0_9 = arith.constant 0 : index
    %8 = vector.load %arg7[%c0_8, %c0_9] : memref<8x1xf32, #tpu.memory_space<vmem>>, vector<8x1xf32>
    %9 = vector.broadcast %8 : vector<8x1xf32> to vector<8x64xf32>
    %10 = arith.addf %7, %9 : vector<8x64xf32>
    %cst_10 = arith.constant 2.000000e-01 : f32
    %11 = vector.broadcast %cst_10 : f32 to vector<8x64xf32>
    %12 = arith.mulf %11, %10 : vector<8x64xf32>
    %13 = arith.maximumf %10, %12 : vector<8x64xf32>
    %cst_11 = arith.constant 0.000000e+00 : f32
    %14 = vector.broadcast %cst_11 : f32 to vector<8x64xf32>
    %cst_12 = arith.constant 0.000000e+00 : f32
    %15 = vector.broadcast %cst_12 : f32 to vector<8x64xf32>
    %c0_13 = arith.constant 0 : index
    %c0_14 = arith.constant 0 : index
    %16 = vector.load %arg10[%c0_13, %c0_14] : memref<16x82xbf16, #tpu.memory_space<vmem>>, vector<16x64xbf16>
    %c0_15 = arith.constant 0 : index
    %c0_16 = arith.constant 0 : index
    %c0_17 = arith.constant 0 : index
    %17 = vector.load %arg2[%c0_15, %c0_16, %c0_17] : memref<9x8x16xbf16, #tpu.memory_space<vmem>>, vector<1x8x16xbf16>
    %18 = vector.shape_cast %17 : vector<1x8x16xbf16> to vector<8x16xbf16>
    %cst_18 = arith.constant dense<0.000000e+00> : vector<8x64xf32>
    %19 = tpu.matmul %18, %16, %cst_18 {dimension_numbers = #tpu.dot_dimension_numbers<[1], [0], [0], [1], [0, 0, 1, 1], [], []>} : vector<8x16xbf16>, vector<16x64xbf16>, vector<8x64xf32> -> vector<8x64xf32>
    %20 = arith.addf %15, %19 : vector<8x64xf32>
    %c0_19 = arith.constant 0 : index
    %c8 = arith.constant 8 : index
    %21 = vector.load %arg10[%c0_19, %c8] : memref<16x82xbf16, #tpu.memory_space<vmem>>, vector<16x64xbf16>
    %c3 = arith.constant 3 : index
    %c0_20 = arith.constant 0 : index
    %c0_21 = arith.constant 0 : index
    %22 = vector.load %arg2[%c3, %c0_20, %c0_21] : memref<9x8x16xbf16, #tpu.memory_space<vmem>>, vector<1x8x16xbf16>
    %23 = vector.shape_cast %22 : vector<1x8x16xbf16> to vector<8x16xbf16>
    %cst_22 = arith.constant dense<0.000000e+00> : vector<8x64xf32>
    %24 = tpu.matmul %23, %21, %cst_22 {dimension_numbers = #tpu.dot_dimension_numbers<[1], [0], [0], [1], [0, 0, 1, 1], [], []>} : vector<8x16xbf16>, vector<16x64xbf16>, vector<8x64xf32> -> vector<8x64xf32>
    %25 = arith.addf %20, %24 : vector<8x64xf32>
    %c0_23 = arith.constant 0 : index
    %c16 = arith.constant 16 : index
    %26 = vector.load %arg10[%c0_23, %c16] : memref<16x82xbf16, #tpu.memory_space<vmem>>, vector<16x64xbf16>
    %c6 = arith.constant 6 : index
    %c0_24 = arith.constant 0 : index
    %c0_25 = arith.constant 0 : index
    %27 = vector.load %arg2[%c6, %c0_24, %c0_25] : memref<9x8x16xbf16, #tpu.memory_space<vmem>>, vector<1x8x16xbf16>
    %28 = vector.shape_cast %27 : vector<1x8x16xbf16> to vector<8x16xbf16>
    %cst_26 = arith.constant dense<0.000000e+00> : vector<8x64xf32>
    %29 = tpu.matmul %28, %26, %cst_26 {dimension_numbers = #tpu.dot_dimension_numbers<[1], [0], [0], [1], [0, 0, 1, 1], [], []>} : vector<8x16xbf16>, vector<16x64xbf16>, vector<8x64xf32> -> vector<8x64xf32>
    %30 = arith.addf %25, %29 : vector<8x64xf32>
    %c0_27 = arith.constant 0 : index
    %c0_28 = arith.constant 0 : index
    %31 = vector.load %arg8[%c0_27, %c0_28] : memref<2x64xf32, #tpu.memory_space<vmem>>, vector<1x64xf32>
    %32 = vector.broadcast %31 : vector<1x64xf32> to vector<8x64xf32>
    %33 = arith.mulf %30, %32 : vector<8x64xf32>
    %34 = arith.addf %14, %33 : vector<8x64xf32>
    %cst_29 = arith.constant 0.000000e+00 : f32
    %35 = vector.broadcast %cst_29 : f32 to vector<8x64xf32>
    %c0_30 = arith.constant 0 : index
    %c1 = arith.constant 1 : index
    %36 = vector.load %arg10[%c0_30, %c1] : memref<16x82xbf16, #tpu.memory_space<vmem>>, vector<16x64xbf16>
    %c1_31 = arith.constant 1 : index
    %c0_32 = arith.constant 0 : index
    %c0_33 = arith.constant 0 : index
    %37 = vector.load %arg2[%c1_31, %c0_32, %c0_33] : memref<9x8x16xbf16, #tpu.memory_space<vmem>>, vector<1x8x16xbf16>
    %38 = vector.shape_cast %37 : vector<1x8x16xbf16> to vector<8x16xbf16>
    %cst_34 = arith.constant dense<0.000000e+00> : vector<8x64xf32>
    %39 = tpu.matmul %38, %36, %cst_34 {dimension_numbers = #tpu.dot_dimension_numbers<[1], [0], [0], [1], [0, 0, 1, 1], [], []>} : vector<8x16xbf16>, vector<16x64xbf16>, vector<8x64xf32> -> vector<8x64xf32>
    %40 = arith.addf %35, %39 : vector<8x64xf32>
    %c0_35 = arith.constant 0 : index
    %c9_36 = arith.constant 9 : index
    %41 = vector.load %arg10[%c0_35, %c9_36] : memref<16x82xbf16, #tpu.memory_space<vmem>>, vector<16x64xbf16>
    %c4 = arith.constant 4 : index
    %c0_37 = arith.constant 0 : index
    %c0_38 = arith.constant 0 : index
    %42 = vector.load %arg2[%c4, %c0_37, %c0_38] : memref<9x8x16xbf16, #tpu.memory_space<vmem>>, vector<1x8x16xbf16>
    %43 = vector.shape_cast %42 : vector<1x8x16xbf16> to vector<8x16xbf16>
    %cst_39 = arith.constant dense<0.000000e+00> : vector<8x64xf32>
    %44 = tpu.matmul %43, %41, %cst_39 {dimension_numbers = #tpu.dot_dimension_numbers<[1], [0], [0], [1], [0, 0, 1, 1], [], []>} : vector<8x16xbf16>, vector<16x64xbf16>, vector<8x64xf32> -> vector<8x64xf32>
    %45 = arith.addf %40, %44 : vector<8x64xf32>
    %c0_40 = arith.constant 0 : index
    %c17 = arith.constant 17 : index
    %46 = vector.load %arg10[%c0_40, %c17] : memref<16x82xbf16, #tpu.memory_space<vmem>>, vector<16x64xbf16>
    %c7 = arith.constant 7 : index
    %c0_41 = arith.constant 0 : index
    %c0_42 = arith.constant 0 : index
    %47 = vector.load %arg2[%c7, %c0_41, %c0_42] : memref<9x8x16xbf16, #tpu.memory_space<vmem>>, vector<1x8x16xbf16>
    %48 = vector.shape_cast %47 : vector<1x8x16xbf16> to vector<8x16xbf16>
    %cst_43 = arith.constant dense<0.000000e+00> : vector<8x64xf32>
    %49 = tpu.matmul %48, %46, %cst_43 {dimension_numbers = #tpu.dot_dimension_numbers<[1], [0], [0], [1], [0, 0, 1, 1], [], []>} : vector<8x16xbf16>, vector<16x64xbf16>, vector<8x64xf32> -> vector<8x64xf32>
    %50 = arith.addf %45, %49 : vector<8x64xf32>
    %51 = arith.addf %34, %50 : vector<8x64xf32>
    %cst_44 = arith.constant 0.000000e+00 : f32
    %52 = vector.broadcast %cst_44 : f32 to vector<8x64xf32>
    %c0_45 = arith.constant 0 : index
    %c2 = arith.constant 2 : index
    %53 = vector.load %arg10[%c0_45, %c2] : memref<16x82xbf16, #tpu.memory_space<vmem>>, vector<16x64xbf16>
    %c2_46 = arith.constant 2 : index
    %c0_47 = arith.constant 0 : index
    %c0_48 = arith.constant 0 : index
    %54 = vector.load %arg2[%c2_46, %c0_47, %c0_48] : memref<9x8x16xbf16, #tpu.memory_space<vmem>>, vector<1x8x16xbf16>
    %55 = vector.shape_cast %54 : vector<1x8x16xbf16> to vector<8x16xbf16>
    %cst_49 = arith.constant dense<0.000000e+00> : vector<8x64xf32>
    %56 = tpu.matmul %55, %53, %cst_49 {dimension_numbers = #tpu.dot_dimension_numbers<[1], [0], [0], [1], [0, 0, 1, 1], [], []>} : vector<8x16xbf16>, vector<16x64xbf16>, vector<8x64xf32> -> vector<8x64xf32>
    %57 = arith.addf %52, %56 : vector<8x64xf32>
    %c0_50 = arith.constant 0 : index
    %c10 = arith.constant 10 : index
    %58 = vector.load %arg10[%c0_50, %c10] : memref<16x82xbf16, #tpu.memory_space<vmem>>, vector<16x64xbf16>
    %c5 = arith.constant 5 : index
    %c0_51 = arith.constant 0 : index
    %c0_52 = arith.constant 0 : index
    %59 = vector.load %arg2[%c5, %c0_51, %c0_52] : memref<9x8x16xbf16, #tpu.memory_space<vmem>>, vector<1x8x16xbf16>
    %60 = vector.shape_cast %59 : vector<1x8x16xbf16> to vector<8x16xbf16>
    %cst_53 = arith.constant dense<0.000000e+00> : vector<8x64xf32>
    %61 = tpu.matmul %60, %58, %cst_53 {dimension_numbers = #tpu.dot_dimension_numbers<[1], [0], [0], [1], [0, 0, 1, 1], [], []>} : vector<8x16xbf16>, vector<16x64xbf16>, vector<8x64xf32> -> vector<8x64xf32>
    %62 = arith.addf %57, %61 : vector<8x64xf32>
    %c0_54 = arith.constant 0 : index
    %c18 = arith.constant 18 : index
    %63 = vector.load %arg10[%c0_54, %c18] : memref<16x82xbf16, #tpu.memory_space<vmem>>, vector<16x64xbf16>
    %c8_55 = arith.constant 8 : index
    %c0_56 = arith.constant 0 : index
    %c0_57 = arith.constant 0 : index
    %64 = vector.load %arg2[%c8_55, %c0_56, %c0_57] : memref<9x8x16xbf16, #tpu.memory_space<vmem>>, vector<1x8x16xbf16>
    %65 = vector.shape_cast %64 : vector<1x8x16xbf16> to vector<8x16xbf16>
    %cst_58 = arith.constant dense<0.000000e+00> : vector<8x64xf32>
    %66 = tpu.matmul %65, %63, %cst_58 {dimension_numbers = #tpu.dot_dimension_numbers<[1], [0], [0], [1], [0, 0, 1, 1], [], []>} : vector<8x16xbf16>, vector<16x64xbf16>, vector<8x64xf32> -> vector<8x64xf32>
    %67 = arith.addf %62, %66 : vector<8x64xf32>
    %c1_59 = arith.constant 1 : index
    %c0_60 = arith.constant 0 : index
    %68 = vector.load %arg8[%c1_59, %c0_60] : memref<2x64xf32, #tpu.memory_space<vmem>>, vector<1x64xf32>
    %69 = vector.broadcast %68 : vector<1x64xf32> to vector<8x64xf32>
    %70 = arith.mulf %67, %69 : vector<8x64xf32>
    %71 = arith.addf %51, %70 : vector<8x64xf32>
    %c0_61 = arith.constant 0 : index
    %c0_62 = arith.constant 0 : index
    %72 = vector.load %arg3[%c0_61, %c0_62] : memref<8x1xf32, #tpu.memory_space<vmem>>, vector<8x1xf32>
    %73 = vector.broadcast %72 : vector<8x1xf32> to vector<8x64xf32>
    %74 = arith.addf %71, %73 : vector<8x64xf32>
    %cst_63 = arith.constant 2.000000e-01 : f32
    %75 = vector.broadcast %cst_63 : f32 to vector<8x64xf32>
    %76 = arith.mulf %75, %74 : vector<8x64xf32>
    %77 = arith.maximumf %74, %76 : vector<8x64xf32>
    %cst_64 = arith.constant 0.000000e+00 : bf16
    %78 = vector.broadcast %cst_64 : bf16 to vector<8x82xbf16>
    %c0_65 = arith.constant 0 : index
    %c0_66 = arith.constant 0 : index
    %79 = vector.load %arg11[%c0_65, %c0_66] : memref<8x82xbf16, #tpu.memory_space<vmem>>, vector<8x82xbf16>
    tpu.vector_store %arg11[%c0_65, %c0_66], %78 {strides = array<i32>} : memref<8x82xbf16, #tpu.memory_space<vmem>>, vector<8x82xbf16>,
    %80 = arith.truncf %77 : vector<8x64xf32> to vector<8x64xbf16>
    %c0_67 = arith.constant 0 : index
    %c9_68 = arith.constant 9 : index
    %81 = vector.load %arg11[%c0_67, %c9_68] : memref<8x82xbf16, #tpu.memory_space<vmem>>, vector<8x64xbf16>
    tpu.vector_store %arg11[%c0_67, %c9_68], %80 {strides = array<i32>} : memref<8x82xbf16, #tpu.memory_space<vmem>>, vector<8x64xbf16>,
    %cst_69 = arith.constant 0.000000e+00 : f32
    %82 = vector.broadcast %cst_69 : f32 to vector<8x64xf32>
    %cst_70 = arith.constant 0.000000e+00 : f32
    %83 = vector.broadcast %cst_70 : f32 to vector<8x64xf32>
    %c0_71 = arith.constant 0 : index
    %c0_72 = arith.constant 0 : index
    %84 = vector.load %arg11[%c0_71, %c0_72] : memref<8x82xbf16, #tpu.memory_space<vmem>>, vector<8x64xbf16>
    %c0_73 = arith.constant 0 : index
    %c0_74 = arith.constant 0 : index
    %c0_75 = arith.constant 0 : index
    %85 = vector.load %arg4[%c0_73, %c0_74, %c0_75] : memref<9x8x8xbf16, #tpu.memory_space<vmem>>, vector<1x8x8xbf16>
    %86 = vector.shape_cast %85 : vector<1x8x8xbf16> to vector<8x8xbf16>
    %cst_76 = arith.constant dense<0.000000e+00> : vector<8x64xf32>
    %87 = tpu.matmul %86, %84, %cst_76 {dimension_numbers = #tpu.dot_dimension_numbers<[1], [0], [0], [1], [0, 0, 1, 1], [], []>} : vector<8x8xbf16>, vector<8x64xbf16>, vector<8x64xf32> -> vector<8x64xf32>
    %88 = arith.addf %83, %87 : vector<8x64xf32>
    %c0_77 = arith.constant 0 : index
    %c8_78 = arith.constant 8 : index
    %89 = vector.load %arg11[%c0_77, %c8_78] : memref<8x82xbf16, #tpu.memory_space<vmem>>, vector<8x64xbf16>
    %c3_79 = arith.constant 3 : index
    %c0_80 = arith.constant 0 : index
    %c0_81 = arith.constant 0 : index
    %90 = vector.load %arg4[%c3_79, %c0_80, %c0_81] : memref<9x8x8xbf16, #tpu.memory_space<vmem>>, vector<1x8x8xbf16>
    %91 = vector.shape_cast %90 : vector<1x8x8xbf16> to vector<8x8xbf16>
    %cst_82 = arith.constant dense<0.000000e+00> : vector<8x64xf32>
    %92 = tpu.matmul %91, %89, %cst_82 {dimension_numbers = #tpu.dot_dimension_numbers<[1], [0], [0], [1], [0, 0, 1, 1], [], []>} : vector<8x8xbf16>, vector<8x64xbf16>, vector<8x64xf32> -> vector<8x64xf32>
    %93 = arith.addf %88, %92 : vector<8x64xf32>
    %c0_83 = arith.constant 0 : index
    %c16_84 = arith.constant 16 : index
    %94 = vector.load %arg11[%c0_83, %c16_84] : memref<8x82xbf16, #tpu.memory_space<vmem>>, vector<8x64xbf16>
    %c6_85 = arith.constant 6 : index
    %c0_86 = arith.constant 0 : index
    %c0_87 = arith.constant 0 : index
    %95 = vector.load %arg4[%c6_85, %c0_86, %c0_87] : memref<9x8x8xbf16, #tpu.memory_space<vmem>>, vector<1x8x8xbf16>
    %96 = vector.shape_cast %95 : vector<1x8x8xbf16> to vector<8x8xbf16>
    %cst_88 = arith.constant dense<0.000000e+00> : vector<8x64xf32>
    %97 = tpu.matmul %96, %94, %cst_88 {dimension_numbers = #tpu.dot_dimension_numbers<[1], [0], [0], [1], [0, 0, 1, 1], [], []>} : vector<8x8xbf16>, vector<8x64xbf16>, vector<8x64xf32> -> vector<8x64xf32>
    %98 = arith.addf %93, %97 : vector<8x64xf32>
    %c0_89 = arith.constant 0 : index
    %c0_90 = arith.constant 0 : index
    %99 = vector.load %arg8[%c0_89, %c0_90] : memref<2x64xf32, #tpu.memory_space<vmem>>, vector<1x64xf32>
    %100 = vector.broadcast %99 : vector<1x64xf32> to vector<8x64xf32>
    %101 = arith.mulf %98, %100 : vector<8x64xf32>
    %102 = arith.addf %82, %101 : vector<8x64xf32>
    %cst_91 = arith.constant 0.000000e+00 : f32
    %103 = vector.broadcast %cst_91 : f32 to vector<8x64xf32>
    %c0_92 = arith.constant 0 : index
    %c1_93 = arith.constant 1 : index
    %104 = vector.load %arg11[%c0_92, %c1_93] : memref<8x82xbf16, #tpu.memory_space<vmem>>, vector<8x64xbf16>
    %c1_94 = arith.constant 1 : index
    %c0_95 = arith.constant 0 : index
    %c0_96 = arith.constant 0 : index
    %105 = vector.load %arg4[%c1_94, %c0_95, %c0_96] : memref<9x8x8xbf16, #tpu.memory_space<vmem>>, vector<1x8x8xbf16>
    %106 = vector.shape_cast %105 : vector<1x8x8xbf16> to vector<8x8xbf16>
    %cst_97 = arith.constant dense<0.000000e+00> : vector<8x64xf32>
    %107 = tpu.matmul %106, %104, %cst_97 {dimension_numbers = #tpu.dot_dimension_numbers<[1], [0], [0], [1], [0, 0, 1, 1], [], []>} : vector<8x8xbf16>, vector<8x64xbf16>, vector<8x64xf32> -> vector<8x64xf32>
    %108 = arith.addf %103, %107 : vector<8x64xf32>
    %c0_98 = arith.constant 0 : index
    %c9_99 = arith.constant 9 : index
    %109 = vector.load %arg11[%c0_98, %c9_99] : memref<8x82xbf16, #tpu.memory_space<vmem>>, vector<8x64xbf16>
    %c4_100 = arith.constant 4 : index
    %c0_101 = arith.constant 0 : index
    %c0_102 = arith.constant 0 : index
    %110 = vector.load %arg4[%c4_100, %c0_101, %c0_102] : memref<9x8x8xbf16, #tpu.memory_space<vmem>>, vector<1x8x8xbf16>
    %111 = vector.shape_cast %110 : vector<1x8x8xbf16> to vector<8x8xbf16>
    %cst_103 = arith.constant dense<0.000000e+00> : vector<8x64xf32>
    %112 = tpu.matmul %111, %109, %cst_103 {dimension_numbers = #tpu.dot_dimension_numbers<[1], [0], [0], [1], [0, 0, 1, 1], [], []>} : vector<8x8xbf16>, vector<8x64xbf16>, vector<8x64xf32> -> vector<8x64xf32>
    %113 = arith.addf %108, %112 : vector<8x64xf32>
    %c0_104 = arith.constant 0 : index
    %c17_105 = arith.constant 17 : index
    %114 = vector.load %arg11[%c0_104, %c17_105] : memref<8x82xbf16, #tpu.memory_space<vmem>>, vector<8x64xbf16>
    %c7_106 = arith.constant 7 : index
    %c0_107 = arith.constant 0 : index
    %c0_108 = arith.constant 0 : index
    %115 = vector.load %arg4[%c7_106, %c0_107, %c0_108] : memref<9x8x8xbf16, #tpu.memory_space<vmem>>, vector<1x8x8xbf16>
    %116 = vector.shape_cast %115 : vector<1x8x8xbf16> to vector<8x8xbf16>
    %cst_109 = arith.constant dense<0.000000e+00> : vector<8x64xf32>
    %117 = tpu.matmul %116, %114, %cst_109 {dimension_numbers = #tpu.dot_dimension_numbers<[1], [0], [0], [1], [0, 0, 1, 1], [], []>} : vector<8x8xbf16>, vector<8x64xbf16>, vector<8x64xf32> -> vector<8x64xf32>
    %118 = arith.addf %113, %117 : vector<8x64xf32>
    %119 = arith.addf %102, %118 : vector<8x64xf32>
    %cst_110 = arith.constant 0.000000e+00 : f32
    %120 = vector.broadcast %cst_110 : f32 to vector<8x64xf32>
    %c0_111 = arith.constant 0 : index
    %c2_112 = arith.constant 2 : index
    %121 = vector.load %arg11[%c0_111, %c2_112] : memref<8x82xbf16, #tpu.memory_space<vmem>>, vector<8x64xbf16>
    %c2_113 = arith.constant 2 : index
    %c0_114 = arith.constant 0 : index
    %c0_115 = arith.constant 0 : index
    %122 = vector.load %arg4[%c2_113, %c0_114, %c0_115] : memref<9x8x8xbf16, #tpu.memory_space<vmem>>, vector<1x8x8xbf16>
    %123 = vector.shape_cast %122 : vector<1x8x8xbf16> to vector<8x8xbf16>
    %cst_116 = arith.constant dense<0.000000e+00> : vector<8x64xf32>
    %124 = tpu.matmul %123, %121, %cst_116 {dimension_numbers = #tpu.dot_dimension_numbers<[1], [0], [0], [1], [0, 0, 1, 1], [], []>} : vector<8x8xbf16>, vector<8x64xbf16>, vector<8x64xf32> -> vector<8x64xf32>
    %125 = arith.addf %120, %124 : vector<8x64xf32>
    %c0_117 = arith.constant 0 : index
    %c10_118 = arith.constant 10 : index
    %126 = vector.load %arg11[%c0_117, %c10_118] : memref<8x82xbf16, #tpu.memory_space<vmem>>, vector<8x64xbf16>
    %c5_119 = arith.constant 5 : index
    %c0_120 = arith.constant 0 : index
    %c0_121 = arith.constant 0 : index
    %127 = vector.load %arg4[%c5_119, %c0_120, %c0_121] : memref<9x8x8xbf16, #tpu.memory_space<vmem>>, vector<1x8x8xbf16>
    %128 = vector.shape_cast %127 : vector<1x8x8xbf16> to vector<8x8xbf16>
    %cst_122 = arith.constant dense<0.000000e+00> : vector<8x64xf32>
    %129 = tpu.matmul %128, %126, %cst_122 {dimension_numbers = #tpu.dot_dimension_numbers<[1], [0], [0], [1], [0, 0, 1, 1], [], []>} : vector<8x8xbf16>, vector<8x64xbf16>, vector<8x64xf32> -> vector<8x64xf32>
    %130 = arith.addf %125, %129 : vector<8x64xf32>
    %c0_123 = arith.constant 0 : index
    %c18_124 = arith.constant 18 : index
    %131 = vector.load %arg11[%c0_123, %c18_124] : memref<8x82xbf16, #tpu.memory_space<vmem>>, vector<8x64xbf16>
    %c8_125 = arith.constant 8 : index
    %c0_126 = arith.constant 0 : index
    %c0_127 = arith.constant 0 : index
    %132 = vector.load %arg4[%c8_125, %c0_126, %c0_127] : memref<9x8x8xbf16, #tpu.memory_space<vmem>>, vector<1x8x8xbf16>
    %133 = vector.shape_cast %132 : vector<1x8x8xbf16> to vector<8x8xbf16>
    %cst_128 = arith.constant dense<0.000000e+00> : vector<8x64xf32>
    %134 = tpu.matmul %133, %131, %cst_128 {dimension_numbers = #tpu.dot_dimension_numbers<[1], [0], [0], [1], [0, 0, 1, 1], [], []>} : vector<8x8xbf16>, vector<8x64xbf16>, vector<8x64xf32> -> vector<8x64xf32>
    %135 = arith.addf %130, %134 : vector<8x64xf32>
    %c1_129 = arith.constant 1 : index
    %c0_130 = arith.constant 0 : index
    %136 = vector.load %arg8[%c1_129, %c0_130] : memref<2x64xf32, #tpu.memory_space<vmem>>, vector<1x64xf32>
    %137 = vector.broadcast %136 : vector<1x64xf32> to vector<8x64xf32>
    %138 = arith.mulf %135, %137 : vector<8x64xf32>
    %139 = arith.addf %119, %138 : vector<8x64xf32>
    %c0_131 = arith.constant 0 : index
    %c0_132 = arith.constant 0 : index
    %140 = vector.load %arg5[%c0_131, %c0_132] : memref<8x1xf32, #tpu.memory_space<vmem>>, vector<8x1xf32>
    %141 = vector.broadcast %140 : vector<8x1xf32> to vector<8x64xf32>
    %142 = arith.addf %139, %141 : vector<8x64xf32>
    %cst_133 = arith.constant 2.000000e-01 : f32
    %143 = vector.broadcast %cst_133 : f32 to vector<8x64xf32>
    %144 = arith.mulf %143, %142 : vector<8x64xf32>
    %145 = arith.maximumf %142, %144 : vector<8x64xf32>
    %146 = arith.addf %145, %13 : vector<8x64xf32>
    %c0_134 = arith.constant 0 : index
    %c0_135 = arith.constant 0 : index
    %c0_136 = arith.constant 0 : index
    %147 = vector.load %arg9[%c0_134, %c0_135, %c0_136] : memref<1x8x64xf32, #tpu.memory_space<vmem>>, vector<1x8x64xf32>
    %148 = vector.shape_cast %147 : vector<1x8x64xf32> to vector<8x64xf32>
    %149 = vector.shape_cast %146 : vector<8x64xf32> to vector<1x8x64xf32>
    tpu.vector_store %arg9[%c0_134, %c0_135, %c0_136], %149 {strides = array<i32>} : memref<1x8x64xf32, #tpu.memory_space<vmem>>, vector<1x8x64xf32>,
    return
  }
  func.func @transform_0(%arg0: i32) -> (i32, i32, i32) {
    %c0_i32 = arith.constant 0 : i32
    %c0_i32_0 = arith.constant 0 : i32
    %c0_i32_1 = arith.constant 0 : i32
    return %arg0, %c0_i32, %c0_i32_0 : i32, i32, i32
  }
  func.func @transform_1(%arg0: i32) -> (i32, i32, i32) {
    %c0_i32 = arith.constant 0 : i32
    %c0_i32_0 = arith.constant 0 : i32
    %c0_i32_1 = arith.constant 0 : i32
    %c0_i32_2 = arith.constant 0 : i32
    return %c0_i32, %c0_i32_0, %c0_i32_1 : i32, i32, i32
  }
  func.func @transform_2(%arg0: i32) -> (i32, i32) {
    %c0_i32 = arith.constant 0 : i32
    %c0_i32_0 = arith.constant 0 : i32
    %c0_i32_1 = arith.constant 0 : i32
    return %c0_i32, %c0_i32_0 : i32, i32
  }
  func.func @transform_3(%arg0: i32) -> (i32, i32, i32) {
    %c0_i32 = arith.constant 0 : i32
    %c0_i32_0 = arith.constant 0 : i32
    %c0_i32_1 = arith.constant 0 : i32
    %c0_i32_2 = arith.constant 0 : i32
    return %c0_i32, %c0_i32_0, %c0_i32_1 : i32, i32, i32
  }
  func.func @transform_4(%arg0: i32) -> (i32, i32) {
    %c0_i32 = arith.constant 0 : i32
    %c0_i32_0 = arith.constant 0 : i32
    %c0_i32_1 = arith.constant 0 : i32
    return %c0_i32, %c0_i32_0 : i32, i32
  }
  func.func @transform_5(%arg0: i32) -> (i32, i32) {
    %c0_i32 = arith.constant 0 : i32
    %c0_i32_0 = arith.constant 0 : i32
    %c0_i32_1 = arith.constant 0 : i32
    return %c0_i32, %c0_i32_0 : i32, i32
  }
  func.func @transform_6(%arg0: i32) -> (i32, i32) {
    %c0_i32 = arith.constant 0 : i32
    %c0_i32_0 = arith.constant 0 : i32
    %c0_i32_1 = arith.constant 0 : i32
    return %c0_i32, %c0_i32_0 : i32, i32
  }
  func.func @transform_7(%arg0: i32) -> (i32, i32) {
    %c0_i32 = arith.constant 0 : i32
    %c0_i32_0 = arith.constant 0 : i32
    %c0_i32_1 = arith.constant 0 : i32
    return %c0_i32, %c0_i32_0 : i32, i32
  }
  func.func @transform_8(%arg0: i32) -> (i32, i32, i32) {
    %c0_i32 = arith.constant 0 : i32
    %c0_i32_0 = arith.constant 0 : i32
    %c0_i32_1 = arith.constant 0 : i32
    return %arg0, %c0_i32, %c0_i32_0 : i32, i32, i32
  }
}

</mosaic_0001>

<bundles_post_ra>
// kernel: tpu_custom_call.1
= control target key start
LH: loop header
LB: loop body
LE: loop exit
PB: predicated region body
PF: predicated region fallthrough
CT: control target
= control target key end

     0   :  { %13 = vsyncpa [#allocation5], 0  ;;  %s1326_s0 = inlined_call_operand.vmem [shape: f32[2,16,64], index: 0, kind: input, shape index: {}]   ;;  %s1327_s1 = inlined_call_operand.vmem [shape: bf16[9,8,16], index: 1, kind: input, shape index: {}]   ;;  %s1328_s2 = inlined_call_operand.vmem [shape: f32[8,1], index: 2, kind: input, shape index: {}]   ;;  %s1329_s3 = inlined_call_operand.vmem [shape: bf16[9,8,8], index: 3, kind: input, shape index: {}]   ;;  %s1330_s4 = inlined_call_operand.vmem [shape: f32[8,1], index: 4, kind: input, shape index: {}]   ;;  %s1331_s5 = inlined_call_operand.vmem [shape: bf16[8,16], index: 5, kind: input, shape index: {}]   ;;  %s1332_s6 = inlined_call_operand.vmem [shape: f32[8,1], index: 6, kind: input, shape index: {}]   ;;  %s1333_s7 = inlined_call_operand.vmem [shape: f32[2,64], index: 7, kind: input, shape index: {}]   ;;  %s1334_s8 = inlined_call_operand.hbm [shape: f32[2,8,64], index: 8, kind: output, shape index: {}]  }
   0x1   :  { %15 = vsyncpa [#allocation5 + $0x1], 0  ;;  %s1110_s27 = smov 0   ;;  %s1112_s28 = smov 0  }
   0x2   :  { %s1114_s29 = smov 0   ;;  %s1116_s30 = smov 0  }
   0x3 LB: > { %s1131_s9 = sadd.s32 4294967295, %s1053_s30   ;;  %s883_s10 = sadd.s32 4294967294, %s1053_s30   ;;  %s1053_s30 = sphi %s1116_s30, %s1348_s30   ;;  %s1049_s29 = sphi %s1114_s29, %s1347_s29   ;;  %s1045_s28 = sphi %s1112_s28, %s1346_s28   ;;  %s1041_s27 = sphi %s1110_s27, %s1345_s27  }
   0x4   : > { %s1135_s11 = sadd.s32 1, %s1053_s30   ;;  %s201_s12 = sadd.s32 1, %s1049_s29 }
   0x5   : > { %s198_s13 = ssub.s32 %s1053_s30, %s1135_s11  ;;  %p211_p0 = scmp.ne.s32.totalorder %s1049_s29, %s1045_s28 }
   0x6   : > { %p199_p1 = scmp.eq.s32.totalorder %s198_s13, 0  ;;  %p212_p2 = scmp.eq.s32.totalorder %s1131_s9, 1 }
   0x7   : > { %p217_p3 = scmp.ne.s32.totalorder %s1045_s28, %s1041_s27  ;;  %p218_p4 = scmp.eq.s32.totalorder %s883_s10, 1 }
   0x8   : > { %s1146_s14 = scalar_select %p199_p1, %s1049_s29, %s201_s12  }
   0x9   : > { %p1148_p5 = por %p212_p2, %p211_p0  ;;  %p1152_p6 = por %p218_p4, %p217_p3 }
   0xa   : > { %p886_p7 = scmp.ge.s32.totalorder %s1053_s30, 1  ;;  %p265_p8 = scmp.lt.s32.totalorder %s1053_s30, 3 }
   0xc   : > { %p266_p9 = pnand %p886_p7, %p265_p8 }
   0xd   : > { %p299_p10 = scmp.lt.s32.totalorder (!%p266_p9), %s1131_s9, 1  ;;  %s1056_s22 = smov (!%p266_p9), 9  }
   0xe   : > { %269 = sbr.rel (%p266_p9) target bundleno = 854 (0x356), region = 52  ;;  %s1335_s23 = smov (!%p266_p9), 118  }
   0xf   : > { %s1337_s24 = smov (!%p266_p9), 119   ;;  %s1059_s25 = smov (!%p266_p9), 120  }
  0x10   : > { %s1060_s26 = smov (!%p266_p9), 110   ;;  %s1061_s10 = smov (!%p266_p9), 127  }
  0x11   : > { %s1062_s12 = smov (!%p266_p9), 112   ;;  %s1336_s13 = smov (!%p266_p9), 126  }
  0x12   : > { %s1343_s19 = smov (!%p266_p9), 126  }
  0x13   : > { %vm305_vm0 = vcmask 666624   ;;  %v1055_v0 = vmov 0   ;;  %s300_s17 = scalar_select %p299_p10, %s1131_s9, 1  ;;  %vm320_vm1 = vcmask 592968   ;;  %v323_v13 = vld [vmem:[%s1331_s5] sm:$0xf] }
  0x14   : > { %306 = vst.msk [vmem:[#allocation2] sm:$0xf] %vm305_vm0, %v1055_v0  ;;  %984 = vset.pattern.permute.xlu1 %v1055_v0  ;;  %985 = vset.pattern.permute.xlu2 %v1055_v0  ;;  %vm334_vm2 = vcmask 130048   ;;  %v355_v14 = vld [vmem:[%s1327_s1] sm:$0xf]  ;;  %vm587_vm3 = vcmask 1043456  }
  0x15   : > { %307 = vst.msk [vmem:[#allocation2 + $0x4] sm:$0xf] %vm305_vm0, %v1055_v0  ;;  %986 = vset.pattern.permute.xlu0 %v1055_v0  ;;  %s933_s18 = sshll.u32 %s300_s17, 4  ;;  %s1338_s17 = smov 111   ;;  %v901_v16 = vld [vmem:[%s1327_s1 + $0x10] sm:$0xf] }
  0x16   : > { %567 = vst.msk [vmem:[#allocation3] sm:$0xf] %vm305_vm0, %v1055_v0  ;;  %s303_s21 = scalar_lea.vmem %s1326_s0, %s933_s18  ;;  %v906_v19 = vld [vmem:[%s1327_s1 + $0x8] sm:$0xf]  ;;  %v891_v22 = vld [vmem:[%s1327_s1 + $0xc] sm:$0xf] }
  0x17   : > { %v308_v1 = vld [vmem:[%s303_s21] sm:$0xff]  ;;  %v309_v3 = vld [vmem:[%s303_s21 + $0x8] sm:$0xff]  ;;  %v898_v26 = vld [vmem:[%s1327_s1 + $0x18] sm:$0xf]  ;;  %vm583_vm4 = vcmask 64512   ;;  %vm806_vm5 = vcmask 523264  }
  0x18   : > { %v310_v2 = vpack.c.bf16 %v308_v1, %v308_v1  ;;  %v311_v4 = vpack.c.bf16 %v309_v3, %v309_v3  ;;  %v558_v23 = vld [vmem:[%s1328_s2] sm:$0xff]  ;;  %v904_v29 = vld [vmem:[%s1327_s1 + $0x1c] sm:$0xf]  ;;  %v907_v30 = vld [vmem:[%s1327_s1 + $0x14] sm:$0xf] }
  0x19   : > { %v900_v28 = vld [vmem:[%s1327_s1 + $0x4] sm:$0xf]  ;;  %v910_v31 = vld [vmem:[%s1327_s1 + $0x20] sm:$0xf] }
  0x1a   : > { %314 = vrot.lane.b32.xlu0 %v310_v2, %s1056_s22  ;;  %v330_v10 = vunpack.c.l.b16 %v310_v2  ;;  %v331_v11 = vunpack.c.l.b16 %v311_v4  ;;  %v987_v49 = vld [vmem:[%s1333_s7] ss:$0 sm:$0xff]  ;;  %v988_v55 = vld [vmem:[%s1333_s7 + $0x1] ss:$0 sm:$0xff] }
  0x1c   : > { %v332_v12 = vpack.c.b16 %v331_v11, %v330_v10  ;;  %v324_v10 = vld [vmem:[%s1332_s6] sm:$0xff] }
  0x1d   : > { %v575_v11 = vld [vmem:[%s1329_s3] sm:$0xf] }
  0x1e   : > { %345 = vmatpush.bf16.msra.mxu0 %v332_v12 }
  0x21   : > { %890 = vmatmul.msk.bf16.vlgmr.msra.gmra.mxu0 %vm334_vm2, %v323_v13 }
  0x22   : > { %316 = vrot.lane.b32.xlu0 %v311_v4, %s1056_s22 }
  0x8c   : > { %v315_v5 = vpop.permute.xlu0 %314 }
  0x8d   : > { %321 = vst.msk [vmem:[#allocation2] sm:$0xf] %vm320_vm1, %v315_v5 }
  0x94   : > { %v317_v6 = vpop.permute.xlu0 %316  ;;  %v894_v7 = vld [vmem:[#allocation2] sm:$0xf] }
  0x95   : > { %322 = vst.msk [vmem:[#allocation2 + $0x4] sm:$0xf] %vm320_vm1, %v317_v6 }
  0x9c   : > { %v934_v8 = vld [vmem:[#allocation2] sm:$0xf0] }
  0x9d   : > { %v895_v9 = vor.u32 %v934_v8, %v894_v7 }
  0x9e   : > { %v1218_v32 = vpop.f32.mrf.mxu0 }
  0x9f   : > { %494 = vrot.lane.b32.xlu0 %v895_v9, %s1335_s23  ;;  %429 = vrot.lane.b32.xlu2 %v895_v9, %s1337_s24  ;;  %s1341_s23 = smov 111   ;;  %s1344_s24 = smov 118  }
  0xa0   : > { %363 = vrot.lane.b32.xlu1 %v895_v9, %s1059_s25  ;;  %393 = vmatpush.bf16.msra.mxu2 %v895_v9 }
  0xa3   : > { %897 = vmatmul.msk.bf16.vlgmr.msra.gmra.mxu2 %vm334_vm2, %v355_v14  ;;  %v915_v14 = vld [vmem:[%s1329_s3 + $0x18] sm:$0xf] }
  0xa6   : > { %v349_v33 = vpop.f32.mrf.mxu0 }
  0xa7   : > { %534 = vrot.lane.b32.xlu0 %v895_v9, %s1060_s26  ;;  %448 = vrot.lane.b32.xlu2 %v895_v9, %s1061_s10 }
  0xa8   : > { %401 = vrot.lane.b32.xlu1 %v895_v9, %s1062_s12 }
  0xaf   : > { %513 = vrot.lane.b32.xlu2 %v895_v9, %s1336_s13 }
  0xb0   : > { %469 = vrot.lane.b32.xlu1 %v895_v9, %s1338_s17 }
  0xb8   : > { %561 = vperm.xlu1 %984, %v558_v23  }
  0xf9   : > { %v430_v15 = vpop.permute.xlu2 %429 }
  0xfa   : > { %442 = vmatpush.bf16.msrb.mxu0 %v430_v15 }
  0xfd   : > { %902 = vmatmul.msk.bf16.vlgmr.msrb.gmra.mxu0 %vm334_vm2, %v901_v16 }
 0x101   : > { %v449_v17 = vpop.permute.xlu2 %448 }
 0x109   : > { %v514_v18 = vpop.permute.xlu2 %513 }
 0x10a   : > { %526 = vmatpush.bf16.msra.mxu0 %v514_v18 }
 0x10d   : > { %909 = vmatmul.msk.bf16.vlgmr.msra.gmra.mxu0 %vm334_vm2, %v906_v19 }
 0x111   : > { %v495_v20 = vpop.permute.xlu0 %494 }
 0x112   : > { %v364_v21 = vpop.permute.xlu1 %363 }
 0x113   : > { %376 = vmatpush.bf16.msra.mxu1 %v364_v21 }
 0x116   : > { %896 = vmatmul.msk.bf16.vlgmr.msra.gmra.mxu1 %vm334_vm2, %v891_v22  ;;  %v796_v22 = vld [vmem:[%s1330_s4] sm:$0xff] }
 0x117   : > { %461 = vmatpush.bf16.msrb.mxu1 %v449_v17 }
 0x119   : > { %v535_v24 = vpop.permute.xlu0 %534 }
 0x11a   : > { %v402_v25 = vpop.permute.xlu1 %401 }
 0x11b   : > { %547 = vmatpush.bf16.msra.mxu1 %v535_v24  ;;  %414 = vmatpush.bf16.msra.mxu3 %v402_v25 }
 0x11e   : > { %899 = vmatmul.msk.bf16.vlgmr.msra.gmra.mxu3 %vm334_vm2, %v898_v26 }
 0x11f   : > { %507 = vmatpush.bf16.msrb.mxu3 %v495_v20  ;;  %v912_v20 = vld [vmem:[%s1329_s3 + $0xc] sm:$0xf] }
 0x122   : > { %v470_v27 = vpop.permute.xlu1 %469 }
 0x123   : > { %482 = vmatpush.bf16.msrb.mxu2 %v470_v27  ;;  %v921_v27 = vld [vmem:[%s1329_s3 + $0x1c] sm:$0xf] }
 0x126   : > { %903 = vmatmul.msk.bf16.vlgmr.msrb.gmra.mxu1 %vm334_vm2, %v900_v28  ;;  %905 = vmatmul.msk.bf16.vlgmr.msrb.gmra.mxu2 %vm334_vm2, %v904_v29  ;;  %v395_v34 = vpop.f32.mrf.mxu2  ;;  %v918_v28 = vld [vmem:[%s1329_s3 + $0x10] sm:$0xf] }
 0x12a   : > { %v562_v61 = vpop.permute.xlu1 %561 }
 0x12e   : > { %908 = vmatmul.msk.bf16.vlgmr.msrb.gmra.mxu3 %vm334_vm2, %v907_v30  ;;  %v397_v36 = vpop.f32.mrf.mxu2 }
 0x12f   : > { %v923_v36 = vld [vmem:[%s1329_s3 + $0x8] sm:$0xf] }
 0x136   : > { %911 = vmatmul.msk.bf16.vlgmr.msra.gmra.mxu1 %vm334_vm2, %v910_v31 }
 0x17a   : > { %v444_v35 = vpop.f32.mrf.mxu0 }
 0x182   : > { %v446_v37 = vpop.f32.mrf.mxu0 }
 0x183   : > { %v927_v37 = vld [vmem:[%s1329_s3 + $0x20] sm:$0xf] }
 0x18a   : > { %v528_v38 = vpop.f32.mrf.mxu0 }
 0x192   : > { %v530_v39 = vpop.f32.mrf.mxu0 }
 0x193   : > { %v378_v40 = vpop.f32.mrf.mxu1 }
 0x194   : > { %v396_v47 = vadd.f32 %v395_v34, %v378_v40  ;;  %v917_v34 = vld [vmem:[%s1329_s3 + $0x4] sm:$0xf] }
 0x19b   : > { %v380_v41 = vpop.f32.mrf.mxu1 }
 0x1a1   : > { %v416_v42 = vpop.f32.mrf.mxu3 }
 0x1a2   : > { %v420_v48 = vadd.f32 %v416_v42, %v396_v47 }
 0x1a3   : > { %v463_v43 = vpop.f32.mrf.mxu1 }
 0x1a4   : > { %v464_v50 = vadd.f32 %v463_v43, %v444_v35  ;;  %v423_v57 = vmul.f32 %v987_v49, %v420_v48  ;;  %v924_v35 = vld [vmem:[%s1329_s3 + $0x14] sm:$0xf] }
 0x1a9   : > { %v418_v44 = vpop.f32.mrf.mxu3  ;;  %v484_v45 = vpop.f32.mrf.mxu2 }
 0x1aa   : > { %v488_v53 = vadd.f32 %v484_v45, %v464_v50 }
 0x1ab   : > { %v465_v46 = vpop.f32.mrf.mxu1 }
 0x1ac   : > { %v489_v59 = vadd.f32 %v488_v53, %v423_v57  ;;  %v989_v57 = vld [vmem:[%s1333_s7] ss:$0 sm:$0xff] }
 0x1b1   : > { %v509_v51 = vpop.f32.mrf.mxu3  ;;  %v486_v52 = vpop.f32.mrf.mxu2 }
 0x1b2   : > { %v529_v54 = vadd.f32 %v528_v38, %v509_v51 }
 0x1b3   : > { %v549_v56 = vpop.f32.mrf.mxu1 }
 0x1b4   : > { %v553_v58 = vadd.f32 %v549_v56, %v529_v54 }
 0x1b6   : > { %v556_v60 = vmul.f32 %v988_v55, %v553_v58 }
 0x1b8   : > { %v557_v62 = vadd.f32 %v556_v60, %v489_v59  ;;  %v990_v60 = vld [vmem:[%s1333_s7 + $0x1] ss:$0 sm:$0xff] }
 0x1b9   : > { %v511_v63 = vpop.f32.mrf.mxu3 }
 0x1ba   : > { %v564_v0 = vadd.f32 %v562_v61, %v557_v62 }
 0x1bb   : > { %v551_v1 = vpop.f32.mrf.mxu1 }
 0x1bc   : > { %v565_v2 = vmul.f32 0.2, %v564_v0 }
 0x1be   : > { %v566_v3 = vmax.f32 %v564_v0, %v565_v2 }
 0x1c0   : > { %v568_v4 = vpack.c.bf16 %v566_v3, %v566_v3 }
 0x1c2   : > { %570 = vrot.lane.b32.xlu2 %v568_v4, %s1056_s22  ;;  %s1342_s22 = smov 119  }
 0x21c   : > { %v571_v5 = vpop.permute.xlu2 %570 }
 0x21d   : > { %573 = vst.msk [vmem:[#allocation3] sm:$0xf] %vm320_vm1, %v571_v5 }
 0x224   : > { %v574_v6 = vld [vmem:[#allocation3] sm:$0xf] }
 0x225   : > { %v579_v7 = vunpack.c.l.b16 %v574_v6  ;;  %v608_v8 = vsel %vm587_vm3, %v574_v6, 0 }
 0x226   : > { %617 = vmatpush.bf16.msra.mxu3 %v608_v8 }
 0x227   : > { %v580_v9 = vpack.c.b16 %v579_v7, %v579_v7 }
 0x229   : > { %625 = vrot.lane.b32.xlu2 %v580_v9, %s1062_s12  ;;  %676 = vrot.lane.b32.xlu1 %v580_v9, %s1061_s10  ;;  %s930_s12 = sshll.u32 %s1131_s9, 3 }
 0x22a   : > { %581 = vrot.lane.b32.xlu0 %v580_v9, %s1059_s25  ;;  %914 = vmatmul.msk.bf16.vlgmr.msra.gmra.mxu3 %vm583_vm4, %v575_v11 }
 0x231   : > { %770 = vrot.lane.b32.xlu2 %v580_v9, %s1060_s26  ;;  %699 = vrot.lane.b32.xlu1 %v580_v9, %s1341_s23  ;;  %s819_s26 = scalar_lea.hbm %s1334_s8, %s930_s12 }
 0x232   : > { %655 = vrot.lane.b32.xlu0 %v580_v9, %s1342_s22  ;;  %s823_s21 = sshll.u32 %s819_s26, 4  ;;  %s824_s21 = int_to_ptr.hbm [resolvable:$true] %s823_s21 }
 0x233   : > { %s1005_s23 = sshra.s32 %s824_s21, 4  ;;  %s1006_s23 = int_to_ptr.hbm [resolvable:$true] %s1005_s23 }
 0x234   : > { %s1007_s22 = scalar_lea.hbm %s1006_s23, 8  ;;  %p1012_p0 = scmp.lt.s32.totalorder %s1006_s23, %s1334_s8 }
 0x235   : > { %p1008_p11 = scmp.ne.s32.totalorder %s1006_s23, %s1007_s22 }
 0x237   : > { %p1009_p12 = pnand %p1008_p11, %p1148_p5 }
 0x239   : > { %327 = vperm.xlu2 %985, %v324_v10   ;;  %747 = vrot.lane.b32.xlu1 %v580_v9, %s1343_s19  ;;  %s296_s19 = sand.u32 1, %s1045_s28   ;;  %p1010_p13 = pneg %p1009_p12 }
 0x23a   : > { %726 = vrot.lane.b32.xlu0 %v580_v9, %s1344_s24  ;;  %s887_s24 = sshll.u32 %s296_s19, 3  ;;  %s809_s9 = scalar_lea.sflag [#allocation5], %s296_s19 }
 0x23b   : > { %s298_s17 = scalar_lea.vmem [#allocation4], %s887_s24  ;;  %s1011_s24 = scalar_lea.hbm %s1334_s8, 16 }
 0x23c   : > { %s821_s20 = sshll.u32 %s298_s17, 4  ;;  %p1013_p1 = scmp.lt.s32.totalorder %s1011_s24, %s1007_s22  ;;  %s822_s20 = int_to_ptr.vmem [resolvable:$true] %s821_s20 }
 0x23e   : > { %p1014_p2 = por %p1013_p1, %p1012_p0 }
 0x240   : > { %p1015_p3 = pnand %p1014_p2, %p1010_p13 }
 0x242   : > { %799 = vperm.xlu0 %986, %v796_v22  }
 0x283   : > { %v626_v12 = vpop.permute.xlu2 %625 }
 0x284   : > { %v631_v13 = vsel %vm587_vm3, %v626_v12, 0 }
 0x285   : > { %640 = vmatpush.bf16.msrb.mxu0 %v631_v13 }
 0x288   : > { %916 = vmatmul.msk.bf16.vlgmr.msrb.gmra.mxu0 %vm583_vm4, %v915_v14 }
 0x28b   : > { %v771_v19 = vpop.permute.xlu2 %770 }
 0x28c   : > { %v776_v21 = vsel %vm587_vm3, %v771_v19, 0 }
 0x293   : > { %v328_v61 = vpop.permute.xlu2 %327 }
 0x294   : > { %v348_v1 = vadd.f32 %v1218_v32, %v328_v61 }
 0x296   : > { %v351_v6 = vmul.f32 0.2, %v348_v1 }
 0x298   : > { %v352_v10 = vmax.f32 %v348_v1, %v351_v6 }
 0x29b   : > { %v677_v15 = vpop.permute.xlu1 %676 }
 0x29c   : > { %v682_v16 = vsel %vm587_vm3, %v677_v15, 0  ;;  %v582_v17 = vpop.permute.xlu0 %581 }
 0x29d   : > { %v589_v18 = vsel %vm587_vm3, %v582_v17, 0 }
 0x29e   : > { %598 = vmatpush.bf16.msra.mxu2 %v589_v18 }
 0x2a1   : > { %913 = vmatmul.msk.bf16.vlgmr.msra.gmra.mxu2 %vm583_vm4, %v912_v20 }
 0x2a2   : > { %691 = vmatpush.bf16.msrb.mxu2 %v682_v16 }
 0x2a3   : > { %v700_v23 = vpop.permute.xlu1 %699 }
 0x2a4   : > { %v705_v24 = vsel %vm587_vm3, %v700_v23, 0  ;;  %v656_v25 = vpop.permute.xlu0 %655 }
 0x2a5   : > { %v661_v26 = vsel %vm587_vm3, %v656_v25, 0  ;;  %714 = vmatpush.bf16.msrb.mxu3 %v705_v24 }
 0x2a6   : > { %785 = vmatpush.bf16.msra.mxu2 %v776_v21  ;;  %670 = vmatpush.bf16.msrb.mxu1 %v661_v26 }
 0x2a8   : > { %922 = vmatmul.msk.bf16.vlgmr.msrb.gmra.mxu3 %vm583_vm4, %v921_v27 }
 0x2a9   : > { %919 = vmatmul.msk.bf16.vlgmr.msrb.gmra.mxu1 %vm583_vm4, %v918_v28 }
 0x2ab   : > { %v748_v29 = vpop.permute.xlu1 %747 }
 0x2ac   : > { %v753_v30 = vsel %vm587_vm3, %v748_v29, 0  ;;  %v727_v31 = vpop.permute.xlu0 %726 }
 0x2ad   : > { %v732_v33 = vsel %vm587_vm3, %v727_v31, 0  ;;  %762 = vmatpush.bf16.msra.mxu1 %v753_v30  ;;  %v619_v38 = vpop.f32.mrf.mxu3 }
 0x2ae   : > { %741 = vmatpush.bf16.msra.mxu0 %v732_v33 }
 0x2b1   : > { %920 = vmatmul.msk.bf16.vlgmr.msrb.gmra.mxu2 %vm583_vm4, %v917_v34  ;;  %925 = vmatmul.msk.bf16.vlgmr.msra.gmra.mxu0 %vm583_vm4, %v924_v35 }
 0x2b4   : > { %v800_v4 = vpop.permute.xlu0 %799 }
 0x2b5   : > { %v621_v40 = vpop.f32.mrf.mxu3 }
 0x2b9   : > { %926 = vmatmul.msk.bf16.vlgmr.msra.gmra.mxu1 %vm583_vm4, %v923_v36 }
 0x2c1   : > { %928 = vmatmul.msk.bf16.vlgmr.msra.gmra.mxu2 %vm583_vm4, %v927_v37 }
 0x305   : > { %v642_v39 = vpop.f32.mrf.mxu0 }
 0x30d   : > { %v644_v41 = vpop.f32.mrf.mxu0 }
 0x324   : > { %v600_v42 = vpop.f32.mrf.mxu2 }
 0x325   : > { %v620_v53 = vadd.f32 %v619_v38, %v600_v42 }
 0x326   : > { %v672_v43 = vpop.f32.mrf.mxu1 }
 0x327   : > { %v646_v56 = vadd.f32 %v642_v39, %v620_v53 }
 0x329   : > { %v649_v63 = vmul.f32 %v989_v57, %v646_v56 }
 0x32b   : > { %v716_v44 = vpop.f32.mrf.mxu3 }
 0x32c   : > { %v602_v45 = vpop.f32.mrf.mxu2 }
 0x32e   : > { %v674_v46 = vpop.f32.mrf.mxu1  ;;  %v743_v47 = vpop.f32.mrf.mxu0 }
 0x333   : > { %v718_v48 = vpop.f32.mrf.mxu3 }
 0x334   : > { %v693_v49 = vpop.f32.mrf.mxu2 }
 0x335   : > { %v694_v55 = vadd.f32 %v693_v49, %v672_v43 }
 0x336   : > { %v764_v50 = vpop.f32.mrf.mxu1  ;;  %v745_v51 = vpop.f32.mrf.mxu0 }
 0x337   : > { %v765_v58 = vadd.f32 %v764_v50, %v743_v47  ;;  %v720_v59 = vadd.f32 %v716_v44, %v694_v55 }
 0x339   : > { %v721_v2 = vadd.f32 %v720_v59, %v649_v63 }
 0x33c   : > { %v695_v52 = vpop.f32.mrf.mxu2 }
 0x33e   : > { %v766_v54 = vpop.f32.mrf.mxu1 }
 0x344   : > { %v787_v62 = vpop.f32.mrf.mxu2 }
 0x345   : > { %v791_v0 = vadd.f32 %v787_v62, %v765_v58 }
 0x347   : > { %v794_v3 = vmul.f32 %v990_v60, %v791_v0 }
 0x349   : > { %v795_v5 = vadd.f32 %v794_v3, %v721_v2 }
 0x34b   : > { %v802_v7 = vadd.f32 %v800_v4, %v795_v5 }
 0x34c   : > { %v789_v8 = vpop.f32.mrf.mxu2 }
 0x34d   : > { %v803_v9 = vmul.f32 0.2, %v802_v7 }
 0x34f   : > { %v804_v32 = vmax.f32 %v802_v7, %v803_v9 }
 0x351   : > { %v805_v11 = vadd.f32 %v804_v32, %v352_v10 }
 0x353   : > { %807 = vst.msk [vmem:[%s298_s17] sm:$0xff] %vm806_vm5, %v805_v11 }
 0x354   : > { %1018 = shalt.err (!%p1015_p3)
}
 0x355   : > { %935 = dma.vmem_to_hbm [thread:$0]  (%p1148_p5), %s822_s20, 128, %s824_s21, %s809_s9  }
 0x356 PF: > { %p941_p4 = scmp.ge.s32.totalorder %s1053_s30, 2  ;;  %s835_s19 = sand.u32 1, %s1041_s27  }
 0x357   : > { %s836_s25 = scalar_lea.sflag [#allocation5], %s835_s19 }
 0x358   : > { %p938_p7 = pnand %p941_p4, %p1152_p6 }
 0x35a   : > { %p939_p8 = pneg %p938_p7 }
 0x35c   : > { %1036 = dma.done.wait (%p939_p8), %s836_s25, 128  }
 0x35d   : > { %1038 = vsyncadd (%p939_p8), %s836_s25, 4294967168  ;;  %p18_p9 = scmp.ge.s32.totalorder %s1135_s11, 4   ;;  %s1345_s27 = smov %s1045_s28 }
 0x35e   : > { %s1346_s28 = smov %s1049_s29  ;;  %s1347_s29 = smov %s1146_s14 }
 0x35f   : > { %s1348_s30 = smov %s1135_s11  ;;  %20 = sbr.rel (!%p18_p9) target bundleno = 3 (0x3), region = 103 }
 0x364   :  { %842 = vsyncpa [#allocation5], 1 }
 0x365   :  { %844 = vsyncpa [#allocation5 + $0x1], 1 }

</bundles_post_ra>
